<compile_context>
chip_gen: v5e
topology: v5e:2x2
jax: 0.10.0
libtpu: 0.0.40
codegen_flags: <defaults>
</compile_context>

<pallas_src>
import jax
import jax.numpy as jnp
from jax.experimental import pallas as pl
from jax.experimental.pallas import tpu as pltpu


def _bn_gelu_kernel(x_ref, scale_ref, bias_ref, o_ref):
    # x_ref:     (BR, BL) data tile
    # scale_ref: (BR, 1)  per-row scale   OR (1, BL) per-lane scale
    # bias_ref:  same shape as scale_ref
    # jnp broadcasting handles either parameter layout identically.
    x = x_ref[...].astype(jnp.float32)
    y = x * scale_ref[...] + bias_ref[...]
    inv_sqrt2 = 0.7071067811865476
    g = 0.5 * y * (1.0 + jax.lax.erf(y * inv_sqrt2))
    o_ref[...] = g.astype(o_ref.dtype)


def _pick_block(dim, align, target):
    """Largest legal block <= target: full extent if small, else align-multiple."""
    if dim <= target:
        return dim                       # full array extent — always legal
    return max(align, (target // align) * align)


def bn_gelu(x_nchw, gamma, beta, running_mean, running_var, eps=1e-5,
            *, row_block_target=512, lane_block_target=4096,
            max_block_bytes=4 * 1024 * 1024):
    """x_nchw: (N, C, H, W). Returns (N, C, H, W). Eval-mode BN + exact GELU."""
    N, C, H, W = x_nchw.shape
    dtype = x_nchw.dtype
    itemsize = jnp.dtype(dtype).itemsize

    # Fold BN into per-channel scale/bias (parameter glue, plain JAX).
    inv_std = 1.0 / jnp.sqrt(running_var.astype(jnp.float32) + eps)
    scale_c = gamma.astype(jnp.float32) * inv_std                        # (C,)
    bias_c = (beta.astype(jnp.float32)
              - running_mean.astype(jnp.float32) * scale_c)              # (C,)

    hw = H * W
    # Lane-density guard: prefer rows=(n,c), lanes=(h,w) when H*W is a clean
    # 128-multiple (tiny per-row scale column). Otherwise put C*H*W on the
    # lane axis so the output slab is as lane-dense as possible and ragged
    # masking happens once per row instead of on every (n,c) row tail.
    use_per_row = (hw % 128 == 0) and (hw >= 128)
    if use_per_row:
        rows, lanes = N * C, hw
        x2d = x_nchw.reshape(rows, lanes)                 # contiguous, free
        scale2d = jnp.tile(scale_c, N).reshape(rows, 1)
        bias2d = jnp.tile(bias_c, N).reshape(rows, 1)
    else:
        rows, lanes = N, C * hw
        x2d = x_nchw.reshape(rows, lanes)                 # contiguous, free
        scale2d = jnp.repeat(scale_c, hw).reshape(1, lanes)
        bias2d = jnp.repeat(bias_c, hw).reshape(1, lanes)

    # dtype-aware sublane alignment: f32 -> 8, bf16 -> 16, int8/fp8 -> 32.
    row_align = max(8, 32 // itemsize)

    # Lane block (128-aligned or full extent), then row block capped so one
    # block stays <= max_block_bytes (~4 MiB); 2 in + 2 out buffers ~ 16 MiB.
    bl = _pick_block(lanes, 128, lane_block_target)
    budget_rows = (max_block_bytes // max(bl * itemsize, 1) // row_align) * row_align
    budget_rows = max(row_align, budget_rows)
    br = _pick_block(rows, row_align, min(row_block_target, budget_rows))

    grid = (pl.cdiv(rows, br), pl.cdiv(lanes, bl))   # lane axis last: the
    # scale/bias block index stays constant across consecutive steps.

    if use_per_row:
        sb_spec = pl.BlockSpec((br, 1), lambda i, j: (i, 0))
    else:
        sb_spec = pl.BlockSpec((1, bl), lambda i, j: (0, j))

    n_elem = rows * lanes
    cost = pl.CostEstimate(
        flops=8 * n_elem,
        transcendentals=n_elem,
        bytes_accessed=2 * n_elem * itemsize + 2 * scale2d.size * 4,
    )

    out2d = pl.pallas_call(
        _bn_gelu_kernel,
        out_shape=jax.ShapeDtypeStruct((rows, lanes), dtype),
        grid_spec=pltpu.PrefetchScalarGridSpec(
            num_scalar_prefetch=0,
            grid=grid,
            in_specs=[
                pl.BlockSpec((br, bl), lambda i, j: (i, j)),
                sb_spec,
                sb_spec,
            ],
            out_specs=pl.BlockSpec((br, bl), lambda i, j: (i, j)),
        ),
        compiler_params=pltpu.CompilerParams(
            dimension_semantics=("parallel", "parallel"),
            vmem_limit_bytes=48 * 1024 * 1024,
        ),
        cost_estimate=cost,
    )(x2d, scale2d, bias2d)

    # Free contiguous reshape back to NCHW.
    return out2d.reshape(N, C, H, W)


def _reference(x, gamma, beta, mean, var, eps=1e-5):
    xf = x.astype(jnp.float32)
    y = (xf - mean[None, :, None, None]) / jnp.sqrt(var[None, :, None, None] + eps)
    y = y * gamma[None, :, None, None] + beta[None, :, None, None]
    return 0.5 * y * (1.0 + jax.lax.erf(y / jnp.sqrt(2.0)))


if __name__ == "__main__":
    key = jax.random.PRNGKey(0)
    kx, kg, kb, km, kv, kx2 = jax.random.split(key, 6)

    N, C = 2, 4
    gamma = 1.0 + 0.1 * jax.random.normal(kg, (C,), dtype=jnp.float32)
    beta = 0.1 * jax.random.normal(kb, (C,), dtype=jnp.float32)
    running_mean = 0.05 * jax.random.normal(km, (C,), dtype=jnp.float32)
    running_var = 1.0 + 0.1 * jax.random.uniform(kv, (C,), dtype=jnp.float32)

    # Case 1: 128-aligned spatial size (per-row scale/bias layout).
    x = jax.random.normal(kx, (N, C, 16, 16), dtype=jnp.float32)
    out = jax.block_until_ready(bn_gelu(x, gamma, beta, running_mean, running_var))
    ref = _reference(x, gamma, beta, running_mean, running_var)
    assert out.shape == x.shape
    assert jnp.max(jnp.abs(out - ref)) < 1e-5, "mismatch vs reference (16x16)"

    # Case 2: CNN-tail spatial size 7x7 (lane-density fallback layout).
    x2 = jax.random.normal(kx2, (N, C, 7, 7), dtype=jnp.float32)
    out2 = jax.block_until_ready(bn_gelu(x2, gamma, beta, running_mean, running_var))
    ref2 = _reference(x2, gamma, beta, running_mean, running_var)
    assert out2.shape == x2.shape
    assert jnp.max(jnp.abs(out2 - ref2)) < 1e-5, "mismatch vs reference (7x7)"

    print("KERNEL_OK")
</pallas_src>

<mosaic_0001>
module attributes {stable_mosaic.version = 11 : i64} {
  func.func @_bn_gelu_kernel(%arg0: i32, %arg1: i32, %arg2: memref<8x256xf32, #tpu.memory_space<vmem>>, %arg3: memref<8x1xf32, #tpu.memory_space<vmem>>, %arg4: memref<8x1xf32, #tpu.memory_space<vmem>>, %arg5: memref<8x256xf32, #tpu.memory_space<vmem>>) attributes {dimension_semantics = [#tpu.dimension_semantics<parallel>, #tpu.dimension_semantics<parallel>], iteration_bounds = array<i64: 1, 1>, scalar_prefetch = 0 : i64, scratch_operands = 0 : i64, tpu.core_type = #tpu.core_type<tc>, window_params = [{transform_indices = @transform_0, window_bounds = array<i64: 8, 256>}, {transform_indices = @transform_1, window_bounds = array<i64: 8, 1>}, {transform_indices = @transform_2, window_bounds = array<i64: 8, 1>}, {transform_indices = @transform_3, window_bounds = array<i64: 8, 256>}]} {
    %c0 = arith.constant 0 : index
    %c0_0 = arith.constant 0 : index
    %0 = vector.load %arg2[%c0, %c0_0] : memref<8x256xf32, #tpu.memory_space<vmem>>, vector<8x256xf32>
    %c0_1 = arith.constant 0 : index
    %c0_2 = arith.constant 0 : index
    %1 = vector.load %arg3[%c0_1, %c0_2] : memref<8x1xf32, #tpu.memory_space<vmem>>, vector<8x1xf32>
    %2 = vector.broadcast %1 : vector<8x1xf32> to vector<8x256xf32>
    %3 = arith.mulf %0, %2 : vector<8x256xf32>
    %c0_3 = arith.constant 0 : index
    %c0_4 = arith.constant 0 : index
    %4 = vector.load %arg4[%c0_3, %c0_4] : memref<8x1xf32, #tpu.memory_space<vmem>>, vector<8x1xf32>
    %5 = vector.broadcast %4 : vector<8x1xf32> to vector<8x256xf32>
    %6 = arith.addf %3, %5 : vector<8x256xf32>
    %cst = arith.constant 5.000000e-01 : f32
    %7 = vector.broadcast %cst : f32 to vector<8x256xf32>
    %8 = arith.mulf %7, %6 : vector<8x256xf32>
    %cst_5 = arith.constant 0.707106769 : f32
    %9 = vector.broadcast %cst_5 : f32 to vector<8x256xf32>
    %10 = arith.mulf %6, %9 : vector<8x256xf32>
    %11 = math.erf %10 : vector<8x256xf32>
    %cst_6 = arith.constant 1.000000e+00 : f32
    %12 = vector.broadcast %cst_6 : f32 to vector<8x256xf32>
    %13 = arith.addf %12, %11 : vector<8x256xf32>
    %14 = arith.mulf %8, %13 : vector<8x256xf32>
    %c0_7 = arith.constant 0 : index
    %c0_8 = arith.constant 0 : index
    %15 = vector.load %arg5[%c0_7, %c0_8] : memref<8x256xf32, #tpu.memory_space<vmem>>, vector<8x256xf32>
    tpu.vector_store %arg5[%c0_7, %c0_8], %14 {strides = array<i32>} : memref<8x256xf32, #tpu.memory_space<vmem>>, vector<8x256xf32>,
    return
  }
  func.func @transform_0(%arg0: i32, %arg1: i32) -> (i32, i32) {
    %c0_i32 = arith.constant 0 : i32
    return %arg0, %arg1 : i32, i32
  }
  func.func @transform_1(%arg0: i32, %arg1: i32) -> (i32, i32) {
    %c0_i32 = arith.constant 0 : i32
    %c0_i32_0 = arith.constant 0 : i32
    return %arg0, %c0_i32 : i32, i32
  }
  func.func @transform_2(%arg0: i32, %arg1: i32) -> (i32, i32) {
    %c0_i32 = arith.constant 0 : i32
    %c0_i32_0 = arith.constant 0 : i32
    return %arg0, %c0_i32 : i32, i32
  }
  func.func @transform_3(%arg0: i32, %arg1: i32) -> (i32, i32) {
    %c0_i32 = arith.constant 0 : i32
    return %arg0, %arg1 : i32, i32
  }
}

</mosaic_0001>

<bundles_post_ra>
// kernel: tpu_custom_call.1
= control target key start
LH: loop header
LB: loop body
LE: loop exit
PB: predicated region body
PF: predicated region fallthrough
CT: control target
= control target key end

     0   :  { %s229_s0 = inlined_call_operand.vmem [shape: f32[8,256], index: 0, kind: input, shape index: {}]   ;;  %s230_s1 = inlined_call_operand.vmem [shape: f32[8,1], index: 1, kind: input, shape index: {}]   ;;  %s231_s2 = inlined_call_operand.vmem [shape: f32[8,1], index: 2, kind: input, shape index: {}]   ;;  %s232_s3 = inlined_call_operand.hbm [shape: f32[8,256], index: 3, kind: output, shape index: {}]  }
   0x1   :  { %v17_v0 = vld [vmem:[%s230_s1] sm:$0xff] }
   0x2   :  { %8 = vsyncpa [#allocation3], 0  ;;  %v174_v1 = vmov 0   ;;  %v25_v2 = vld [vmem:[%s231_s2] sm:$0xff]  ;;  %v16_v5 = vld [vmem:[%s229_s0 + $0x8] sm:$0xff]  ;;  %s130_s21 = sshll.u32 %s232_s3, 4  ;;  %s131_s21 = int_to_ptr.hbm [resolvable:$true] %s130_s21 }
   0x3   :  { %143 = vset.pattern.permute.xlu0 %v174_v1  ;;  %v15_v4 = vld [vmem:[%s229_s0] sm:$0xff]  ;;  %s175_s0 = smov [#allocation2]  }
   0x4   :  { %20 = vperm.xlu0 %143, %v17_v0   ;;  %s128_s1 = sshll.u32 %s175_s0, 4  ;;  %s129_s1 = int_to_ptr.vmem [resolvable:$true] %s128_s1 }
   0xc   :  { %28 = vperm.xlu0 %143, %v25_v2  }
  0x76   :  { %v21_v3 = vpop.permute.xlu0 %20 }
  0x77   :  { %v23_v6 = vmul.f32 %v21_v3, %v15_v4  ;;  %v24_v7 = vmul.f32 %v21_v3, %v16_v5 }
  0x7e   :  { %v29_v8 = vpop.permute.xlu0 %28 }
  0x7f   :  { %v208_v9 = vadd.f32 %v29_v8, %v23_v6  ;;  %v210_v10 = vadd.f32 %v29_v8, %v24_v7 }
  0x81   :  { %v213_v11 = vmul.f32 0.70710677, %v208_v9  ;;  %v216_v12 = vmul.f32 0.70710677, %v210_v10 }
  0x83   :  { %v37_v13 = vmul.f32 %v213_v11, %v213_v11  ;;  %v77_v14 = vmul.f32 %v216_v12, %v216_v12 }
  0x85   :  { %v38_v15 = vmin.f32 %v37_v13, 16.0  ;;  %v78_v16 = vmin.f32 %v77_v14, 16.0 }
  0x87   :  { %v39_v17 = vmul.f32 2.1237322e-06, %v38_v15  ;;  %v50_v18 = vmul.f32 3.8918573e-05, %v38_v15  ;;  %v79_v19 = vmul.f32 2.1237322e-06, %v78_v16 }
  0x88   :  { %v90_v20 = vmul.f32 3.8918573e-05, %v78_v16 }
  0x89   :  { %v40_v21 = vadd.f32 0.00028619796, %v39_v17  ;;  %v51_v22 = vadd.f32 0.001143296, %v50_v18  ;;  %v80_v23 = vadd.f32 0.00028619796, %v79_v19 }
  0x8a   :  { %v91_v24 = vadd.f32 0.001143296, %v90_v20 }
  0x8b   :  { %v41_v25 = vmul.f32 %v40_v21, %v38_v15  ;;  %v52_v26 = vmul.f32 %v51_v22, %v38_v15  ;;  %v81_v27 = vmul.f32 %v80_v23, %v78_v16  ;;  %v33_v23 = vmul.f32 0.5, %v208_v9 }
  0x8c   :  { %v92_v28 = vmul.f32 %v91_v24, %v78_v16 }
  0x8d   :  { %v42_v29 = vadd.f32 0.0036580483, %v41_v25  ;;  %v53_v30 = vadd.f32 0.014752088, %v52_v26  ;;  %v82_v33 = vadd.f32 0.0036580483, %v81_v27 }
  0x8e   :  { %v93_v31 = vadd.f32 0.014752088, %v92_v28 }
  0x8f   :  { %v54_v32 = vmul.f32 %v53_v30, %v38_v15  ;;  %v43_v35 = vmul.f32 %v42_v29, %v38_v15  ;;  %v83_v39 = vmul.f32 %v82_v33, %v78_v16 }
  0x90   :  { %v94_v34 = vmul.f32 %v93_v31, %v78_v16 }
  0x91   :  { %v55_v36 = vadd.f32 0.112945676, %v54_v32  ;;  %v44_v41 = vadd.f32 0.05243302, %v43_v35  ;;  %v84_v45 = vadd.f32 0.05243302, %v83_v39 }
  0x92   :  { %v95_v37 = vadd.f32 0.112945676, %v94_v34 }
  0x93   :  { %v56_v38 = vmul.f32 %v55_v36, %v38_v15  ;;  %v45_v47 = vmul.f32 %v44_v41, %v38_v15  ;;  %v85_v50 = vmul.f32 %v84_v45, %v78_v16 }
  0x94   :  { %v96_v40 = vmul.f32 %v95_v37, %v78_v16 }
  0x95   :  { %v57_v42 = vadd.f32 0.4994258, %v56_v38  ;;  %v46_v51 = vadd.f32 0.18741608, %v45_v47  ;;  %v86_v52 = vadd.f32 0.18741608, %v85_v50 }
  0x96   :  { %v97_v43 = vadd.f32 0.4994258, %v96_v40 }
  0x97   :  { %v58_v44 = vmul.f32 %v57_v42, %v38_v15  ;;  %v47_v54 = vmul.f32 %v46_v51, %v38_v15  ;;  %v87_v57 = vmul.f32 %v86_v52, %v78_v16 }
  0x98   :  { %v98_v46 = vmul.f32 %v97_v43, %v78_v16 }
  0x99   :  { %v59_v48 = vadd.f32 1.0, %v58_v44  ;;  %v48_v60 = vadd.f32 1.1283791, %v47_v54  ;;  %v88_v2 = vadd.f32 1.1283791, %v87_v57 }
  0x9a   :  { %v99_v49 = vadd.f32 1.0, %v98_v46 }
  0x9b   :  { %144 = vrcp.f32 %v59_v48  ;;  %v71_v61 = vand.u32 2147483648, %v59_v48  ;;  %v69_v0 = vand.u32 2147483647, %v59_v48  ;;  %vm65_vm2 = vweird.f32 %v59_v48 }
  0x9c   :  { %146 = vrcp.f32 %v99_v49  ;;  %v111_v1 = vand.u32 2147483648, %v99_v49  ;;  %v109_v4 = vand.u32 2147483647, %v99_v49  ;;  %vm105_vm4 = vweird.f32 %v99_v49 }
  0x9d   :  { %v72_v6 = vor.u32 1.1754944e-38, %v71_v61  ;;  %v49_v8 = vmul.f32 %v48_v60, %v213_v11  ;;  %vm70_vm5 = vcmp.eq.f32.partialorder %v69_v0, 8.507059e+37  ;;  %v89_v16 = vmul.f32 %v88_v2, %v216_v12 }
  0x9e   :  { %v112_v14 = vor.u32 1.1754944e-38, %v111_v1  ;;  %vm110_vm7 = vcmp.eq.f32.partialorder %v109_v4, 8.507059e+37  ;;  %v34_v11 = vmul.f32 0.5, %v210_v10 }
  0xa1   :  { %v145_v53 = vpop.eup %144 }
  0xa2   :  { %v147_v55 = vpop.eup %146  ;;  %v61_v56 = vmul.f32 %v145_v53, %v59_v48  ;;  %vm66_vm0 = vweird.f32 %v145_v53 }
  0xa3   :  { %v101_v58 = vmul.f32 %v147_v55, %v99_v49  ;;  %vm106_vm1 = vweird.f32 %v147_v55  ;;  %vm67_vm3 = vmor %vm65_vm2, %vm66_vm0 }
  0xa4   :  { %v62_v59 = vsub.f32 1.0, %v61_v56  ;;  %vm107_vm6 = vmor %vm105_vm4, %vm106_vm1 }
  0xa5   :  { %v102_v62 = vsub.f32 1.0, %v101_v58 }
  0xa6   :  { %v63_v63 = vmul.f32 %v145_v53, %v62_v59 }
  0xa7   :  { %v103_v3 = vmul.f32 %v147_v55, %v102_v62 }
  0xa8   :  { %v64_v5 = vadd.f32 %v145_v53, %v63_v63 }
  0xa9   :  { %v104_v7 = vadd.f32 %v147_v55, %v103_v3 }
  0xaa   :  { %v68_v13 = vsel %vm67_vm3, %v145_v53, %v64_v5 }
  0xab   :  { %v73_v15 = vsel %vm70_vm5, %v72_v6, %v68_v13  ;;  %v108_v17 = vsel %vm107_vm6, %v147_v55, %v104_v7 }
  0xac   :  { %v74_v18 = vmul.f32 %v73_v15, %v49_v8  ;;  %v113_v19 = vsel %vm110_vm7, %v112_v14, %v108_v17 }
  0xad   :  { %v114_v20 = vmul.f32 %v113_v19, %v89_v16 }
  0xae   :  { %v139_v21 = vclamps-f32 %v74_v18, 1.0 }
  0xaf   :  { %v140_v22 = vclamps-f32 %v114_v20, 1.0 }
  0xb0   :  { %v117_v24 = vadd.f32 1.0, %v139_v21 }
  0xb1   :  { %v118_v25 = vadd.f32 1.0, %v140_v22 }
  0xb2   :  { %v119_v12 = vmul.f32 %v117_v24, %v33_v23 }
  0xb3   :  { %v120_v26 = vmul.f32 %v118_v25, %v34_v11 }
  0xb4   :  { %121 = vst [vmem:[#allocation2] sm:$0xff] %v119_v12 }
  0xb5   :  { %122 = vst [vmem:[#allocation2 + $0x8] sm:$0xff] %v120_v26 }
  0xb6   :  { %133 = dma.vmem_to_hbm [thread:$0]  %s129_s1, 256, %s131_s21, [#allocation3]  }
  0xb7   :  { %172 = dma.done.wait [#allocation3], 256  }
  0xb8   :  { %173 = vsyncadd [#allocation3], 4294967040 }
  0xb9   :  { %138 = vsyncpa [#allocation3], 1 }

</bundles_post_ra>
